<compile_context>
chip_gen: v5e
topology: v5e:2x2
jax: 0.10.0
libtpu: 0.0.40
codegen_flags: <defaults>
</compile_context>

<pallas_src>
import functools

import jax
import jax.numpy as jnp
from jax.experimental import pallas as pl
from jax.experimental.pallas import tpu as pltpu


# --------------------------- VMEM budget policy -----------------------------


def _tpu_vmem_capacity_bytes() -> int:
    try:
        return int(pltpu.get_tpu_info().vmem_capacity_bytes)
    except Exception:
        return 64 * 1024 * 1024  # conservative fallback (v7x-sized VMEM)


_VMEM_CAP = _tpu_vmem_capacity_bytes()
# Scoped limit: 3/4 of physical, capped at 96 MiB.
#   v5e/v6e (128 MiB physical) -> 96 MiB; v7x (64 MiB physical) -> 48 MiB.
_VMEM_LIMIT_BYTES = max(32 * 1024 * 1024, min(int(_VMEM_CAP * 3 // 4), 96 * 1024 * 1024))
# Tile-sizing budget: leave headroom for compiler-internal scratch.
_TILE_BUDGET_BYTES = int(_VMEM_LIMIT_BYTES * 0.7)


def _pick_tile_n(n: int, c: int, itemsize: int, *, io_buffers: int,
                 f32_temps: int, budget_bytes: int) -> int:
    """Largest batch tile (multiple of 8) whose streamed I/O buffers plus the
    in-kernel f32 temporaries fit the VMEM budget.  Narrow class dims are
    padded to 128 lanes in VMEM, so budget with the padded width."""
    padded_c = max(128, ((c + 127) // 128) * 128)
    per_row = (io_buffers * padded_c * itemsize      # double-buffered logits/dlogits
               + f32_temps * padded_c * 4            # f32 upcast/exp/softmax temps
               + 2 * 128 * 4)                        # target column (2 buffers, lane-padded)
    rows = budget_bytes // max(1, per_row)
    tile = max(8, (rows // 8) * 8)
    tile = min(tile, 32768)                          # sanity ceiling (overhead fully amortized)
    if tile >= n:
        return int(n)                                # whole batch in one (full-dim) block
    return int(tile)


# ----------------------------- forward kernel ------------------------------


def _ce_fwd_kernel(logits_ref, tgt_ref, out_ref, *, n_total, tile_n, steps):
    p_id = pl.program_id(0)           # partial (per-TensorCore on v7x)
    i_id = pl.program_id(1)           # serial step within this partial

    @pl.when(i_id == 0)
    def _():
        out_ref[...] = jnp.zeros_like(out_ref)

    logits = logits_ref[...].astype(jnp.float32)               # (tile_n, C)
    tgt = tgt_ref[...]                                          # (tile_n, 1) int32

    # Numerically-stable -log p[target] without materializing log_probs:
    #   -log p[t] = logsumexp(shifted) - shifted[t]
    m = jnp.max(logits, axis=-1, keepdims=True)
    shifted = logits - m
    lse = jnp.log(jnp.sum(jnp.exp(shifted), axis=-1, keepdims=True))   # (tile_n, 1)
    col = jax.lax.broadcasted_iota(jnp.int32, logits.shape, 1)
    picked = jnp.sum(jnp.where(col == tgt, shifted, 0.0),
                     axis=-1, keepdims=True)                           # (tile_n, 1)
    per_row = lse - picked                                             # (tile_n, 1)

    if n_total % tile_n == 0:
        partial = jnp.sum(per_row)
    else:
        # Ragged grid: mask rows beyond the true batch size with a SELECT
        # (never a multiply -- padded rows may be NaN/inf).
        tile_idx = p_id * steps + i_id
        row = jax.lax.broadcasted_iota(jnp.int32, (tile_n, 1), 0) + tile_idx * tile_n
        partial = jnp.sum(jnp.where(row < n_total, per_row, 0.0))

    # Accumulate into the resident per-partial output block (scalar broadcast;
    # the wrapper reads element [p, 0, 0]).
    out_ref[...] += partial


def _ce_forward(logits, tgt2d, tile_n):
    n, c = logits.shape
    total_tiles = pl.cdiv(n, tile_n)
    # Two partial sums when the tile count splits evenly -> megacore-shardable
    # leading "parallel" axis on v7x; harmless serial outer loop elsewhere.
    num_partials = 2 if (total_tiles % 2 == 0 and total_tiles >= 2) else 1
    steps = total_tiles // num_partials

    kernel = functools.partial(_ce_fwd_kernel, n_total=n, tile_n=tile_n, steps=steps)
    out = pl.pallas_call(
        kernel,
        out_shape=jax.ShapeDtypeStruct((num_partials, 8, 128), jnp.float32),
        grid=(num_partials, steps),
        in_specs=[
            pl.BlockSpec((tile_n, c), lambda p, i: (p * steps + i, 0)),   # logits (native dtype)
            pl.BlockSpec((tile_n, 1), lambda p, i: (p * steps + i, 0)),   # target column
        ],
        out_specs=pl.BlockSpec((1, 8, 128), lambda p, i: (p, 0, 0)),      # resident per-partial acc
        compiler_params=pltpu.CompilerParams(
            dimension_semantics=("parallel", "arbitrary"),
            vmem_limit_bytes=_VMEM_LIMIT_BYTES,
        ),
    )(logits, tgt2d)
    return jnp.sum(out[:, 0, 0]) * (1.0 / n)       # true mean over N


# ----------------------------- backward kernel -----------------------------


def _ce_bwd_kernel(g_ref, logits_ref, tgt_ref, dlogits_ref, *,
                   n_total, tile_n, has_ragged):
    pid = pl.program_id(0)

    logits = logits_ref[...].astype(jnp.float32)                # (tile_n, C)
    tgt = tgt_ref[...]                                           # (tile_n, 1)

    m = jnp.max(logits, axis=-1, keepdims=True)
    e = jnp.exp(logits - m)
    p = e / jnp.sum(e, axis=-1, keepdims=True)                   # softmax

    col = jax.lax.broadcasted_iota(jnp.int32, logits.shape, 1)
    scale = g_ref[0] * (1.0 / n_total)                           # scalar from SMEM
    d = jnp.where(col == tgt, p - 1.0, p) * scale                # (softmax - onehot)*g/N

    if not has_ragged:
        dlogits_ref[...] = d.astype(dlogits_ref.dtype)
    else:
        last = pl.num_programs(0) - 1

        @pl.when(pid != last)
        def _():
            dlogits_ref[...] = d.astype(dlogits_ref.dtype)

        @pl.when(pid == last)
        def _():
            row = jax.lax.broadcasted_iota(jnp.int32, (tile_n, 1), 0) + pid * tile_n
            dlogits_ref[...] = jnp.where(row < n_total, d, 0.0).astype(dlogits_ref.dtype)


def _ce_backward(g, logits, tgt2d, tile_n):
    n, c = logits.shape
    grid = (pl.cdiv(n, tile_n),)
    has_ragged = (n % tile_n) != 0
    g1 = jnp.reshape(jnp.asarray(g, dtype=jnp.float32), (1,))
    kernel = functools.partial(_ce_bwd_kernel, n_total=n, tile_n=tile_n,
                               has_ragged=has_ragged)
    return pl.pallas_call(
        kernel,
        out_shape=jax.ShapeDtypeStruct((n, c), logits.dtype),
        grid=grid,
        in_specs=[
            pl.BlockSpec(memory_space=pltpu.MemorySpace.SMEM),   # upstream grad scalar
            pl.BlockSpec((tile_n, c), lambda i: (i, 0)),
            pl.BlockSpec((tile_n, 1), lambda i: (i, 0)),
        ],
        out_specs=pl.BlockSpec((tile_n, c), lambda i: (i, 0)),
        compiler_params=pltpu.CompilerParams(
            dimension_semantics=("parallel",),   # independent per tile; megacore-shardable
            vmem_limit_bytes=_VMEM_LIMIT_BYTES,
        ),
    )(g1, logits, tgt2d)


# ------------------------------ custom VJP ---------------------------------


@functools.partial(jax.custom_vjp, nondiff_argnums=(2, 3))
def _ce_loss(logits, tgt2d, tile_fwd, tile_bwd):
    return _ce_forward(logits, tgt2d, tile_fwd)


def _ce_loss_fwd(logits, tgt2d, tile_fwd, tile_bwd):
    return _ce_forward(logits, tgt2d, tile_fwd), (logits, tgt2d)


def _ce_loss_bwd(tile_fwd, tile_bwd, res, g):
    logits, tgt2d = res
    return _ce_backward(g, logits, tgt2d, tile_bwd), None


_ce_loss.defvjp(_ce_loss_fwd, _ce_loss_bwd)


def cross_entropy_loss(predictions, targets, tile_fwd=None, tile_bwd=None):
    """predictions: [N, C] (any float dtype), targets: [N] int -> f32 scalar loss."""
    n, c = predictions.shape
    itemsize = jnp.dtype(predictions.dtype).itemsize
    if tile_fwd is None:      # forward streams logits only (2 buffers)
        tile_fwd = _pick_tile_n(n, c, itemsize, io_buffers=2, f32_temps=4,
                                budget_bytes=_TILE_BUDGET_BYTES)
    if tile_bwd is None:      # backward streams logits in + dlogits out (4 buffers)
        tile_bwd = _pick_tile_n(n, c, itemsize, io_buffers=4, f32_temps=4,
                                budget_bytes=_TILE_BUDGET_BYTES)
    tgt2d = targets.astype(jnp.int32).reshape(n, 1)
    return _ce_loss(predictions, tgt2d, int(tile_fwd), int(tile_bwd))


class Loss:
    """JAX/Pallas equivalent of the PyTorch `Loss` module."""

    def __call__(self, predictions, targets):
        loss = cross_entropy_loss(predictions, targets)
        # Keep the scalar on-device (no per-step host sync); convert with
        # float() only at logging time (mirrors loss.item()).
        history = {"total_loss": loss}
        return loss, history


if __name__ == "__main__":
    key = jax.random.PRNGKey(0)
    k_pred, k_tgt = jax.random.split(key)

    batch, num_classes = 8, 10  # MNIST-style logits
    predictions = jax.random.normal(k_pred, (batch, num_classes), dtype=jnp.float32)
    targets = jax.random.randint(k_tgt, (batch,), 0, num_classes, dtype=jnp.int32)

    def _ref_loss(p, t):
        lp = jax.nn.log_softmax(p, axis=-1)
        return -jnp.take_along_axis(lp, t[:, None], axis=-1).mean()

    # Forward
    loss_mod = Loss()
    loss, history = loss_mod(predictions, targets)
    jax.block_until_ready(loss)
    assert jnp.allclose(loss, _ref_loss(predictions, targets), atol=1e-5, rtol=1e-5)

    # Backward (fused custom-VJP Pallas kernel), jitted
    vg = jax.jit(jax.value_and_grad(lambda p: cross_entropy_loss(p, targets)))
    loss_j, grads = vg(predictions)
    jax.block_until_ready((loss_j, grads))
    ref_grads = jax.grad(lambda p: _ref_loss(p, targets))(predictions)
    assert jnp.allclose(loss_j, _ref_loss(predictions, targets), atol=1e-5, rtol=1e-5)
    assert jnp.allclose(grads, ref_grads, atol=1e-5, rtol=1e-5)

    # Multi-step grid, odd tile count (single forward partial) + ragged tail.
    b2 = 20
    p2 = jax.random.normal(k_pred, (b2, num_classes), dtype=jnp.float32)
    t2 = jax.random.randint(k_tgt, (b2,), 0, num_classes, dtype=jnp.int32)
    l2 = cross_entropy_loss(p2, t2, tile_fwd=8, tile_bwd=8)
    g2 = jax.grad(lambda p: cross_entropy_loss(p, t2, tile_fwd=8, tile_bwd=8))(p2)
    jax.block_until_ready((l2, g2))
    assert jnp.allclose(l2, _ref_loss(p2, t2), atol=1e-5, rtol=1e-5)
    assert jnp.allclose(g2, jax.grad(lambda p: _ref_loss(p, t2))(p2),
                        atol=1e-5, rtol=1e-5)

    # Multi-step grid, even tile count (two forward partial sums; the path
    # that shards across TensorCores on v7x) + ragged last backward tile.
    b3 = 28
    p3 = jax.random.normal(k_pred, (b3, num_classes), dtype=jnp.float32)
    t3 = jax.random.randint(k_tgt, (b3,), 0, num_classes, dtype=jnp.int32)
    l3 = cross_entropy_loss(p3, t3, tile_fwd=8, tile_bwd=8)
    g3 = jax.grad(lambda p: cross_entropy_loss(p, t3, tile_fwd=8, tile_bwd=8))(p3)
    jax.block_until_ready((l3, g3))
    assert jnp.allclose(l3, _ref_loss(p3, t3), atol=1e-5, rtol=1e-5)
    assert jnp.allclose(g3, jax.grad(lambda p: _ref_loss(p, t3))(p3),
                        atol=1e-5, rtol=1e-5)

    print("KERNEL_OK")
</pallas_src>

<mosaic_0001>
module attributes {stable_mosaic.version = 11 : i64} {
  func.func @_ce_fwd_kernel(%arg0: i32, %arg1: i32, %arg2: memref<8x10xf32, #tpu.memory_space<vmem>>, %arg3: memref<8x1xi32, #tpu.memory_space<vmem>>, %arg4: memref<1x8x128xf32, #tpu.memory_space<vmem>>) attributes {dimension_semantics = [#tpu.dimension_semantics<parallel>, #tpu.dimension_semantics<arbitrary>], iteration_bounds = array<i64: 1, 1>, scalar_prefetch = 0 : i64, scratch_operands = 0 : i64, tpu.core_type = #tpu.core_type<tc>, window_params = [{transform_indices = @transform_0, window_bounds = array<i64: 8, 10>}, {transform_indices = @transform_1, window_bounds = array<i64: 8, 1>}, {transform_indices = @transform_2, window_bounds = array<i64: 1, 8, 128>}]} {
    %c0_i32 = arith.constant 0 : i32
    %0 = arith.cmpi eq, %arg1, %c0_i32 : i32
    %1 = arith.extui %0 : i1 to i32
    %c0_i32_0 = arith.constant 0 : i32
    %2 = arith.cmpi ne, %1, %c0_i32_0 : i32
    scf.if %2 {
      %cst_14 = arith.constant 0.000000e+00 : f32
      %29 = vector.broadcast %cst_14 : f32 to vector<1x8x128xf32>
      %c0_15 = arith.constant 0 : index
      %c0_16 = arith.constant 0 : index
      %c0_17 = arith.constant 0 : index
      %30 = vector.load %arg4[%c0_15, %c0_16, %c0_17] : memref<1x8x128xf32, #tpu.memory_space<vmem>>, vector<1x8x128xf32>
      tpu.vector_store %arg4[%c0_15, %c0_16, %c0_17], %29 {strides = array<i32>} : memref<1x8x128xf32, #tpu.memory_space<vmem>>, vector<1x8x128xf32>,
    } else {
    }
    %c0 = arith.constant 0 : index
    %c0_1 = arith.constant 0 : index
    %3 = vector.load %arg2[%c0, %c0_1] : memref<8x10xf32, #tpu.memory_space<vmem>>, vector<8x10xf32>
    %c0_2 = arith.constant 0 : index
    %c0_3 = arith.constant 0 : index
    %4 = vector.load %arg3[%c0_2, %c0_3] : memref<8x1xi32, #tpu.memory_space<vmem>>, vector<8x1xi32>
    %cst = arith.constant dense<0xFF800000> : vector<8xf32>
    %5 = vector.multi_reduction <maximumf>, %3, %cst [1] : vector<8x10xf32> to vector<8xf32>
    %6 = vector.shape_cast %5 : vector<8xf32> to vector<8x1xf32>
    %7 = vector.broadcast %6 : vector<8x1xf32> to vector<8x10xf32>
    %8 = arith.subf %3, %7 : vector<8x10xf32>
    %9 = math.exp %8 : vector<8x10xf32>
    %cst_4 = arith.constant dense<0.000000e+00> : vector<8xf32>
    %10 = vector.multi_reduction <add>, %9, %cst_4 [1] : vector<8x10xf32> to vector<8xf32>
    %11 = vector.shape_cast %10 : vector<8xf32> to vector<8x1xf32>
    %12 = math.log %11 : vector<8x1xf32>
    %13 = tpu.iota {dimensions = array<i32: 1>} : vector<8x10xi32>
    %14 = vector.broadcast %4 : vector<8x1xi32> to vector<8x10xi32>
    %15 = arith.cmpi eq, %13, %14 : vector<8x10xi32>
    %cst_5 = arith.constant 0.000000e+00 : f32
    %16 = vector.broadcast %cst_5 : f32 to vector<8x10xf32>
    %17 = arith.select %15, %8, %16 : vector<8x10xi1>, vector<8x10xf32>
    %cst_6 = arith.constant dense<0.000000e+00> : vector<8xf32>
    %18 = vector.multi_reduction <add>, %17, %cst_6 [1] : vector<8x10xf32> to vector<8xf32>
    %19 = vector.shape_cast %18 : vector<8xf32> to vector<8x1xf32>
    %20 = arith.subf %12, %19 : vector<8x1xf32>
    %21 = vector.shape_cast %20 : vector<8x1xf32> to vector<1x8x1xf32>
    %cst_7 = arith.constant dense<0.000000e+00> : vector<1xf32>
    %22 = vector.multi_reduction <add>, %21, %cst_7 [1, 2] : vector<1x8x1xf32> to vector<1xf32>
    %23 = vector.shape_cast %22 : vector<1xf32> to vector<1x1x1xf32>
    %24 = vector.extract %23[0, 0, 0] : f32 from vector<1x1x1xf32>
    %c0_8 = arith.constant 0 : index
    %c0_9 = arith.constant 0 : index
    %c0_10 = arith.constant 0 : index
    %25 = vector.load %arg4[%c0_8, %c0_9, %c0_10] : memref<1x8x128xf32, #tpu.memory_space<vmem>>, vector<1x8x128xf32>
    %26 = vector.broadcast %24 : f32 to vector<1x8x128xf32>
    %27 = arith.addf %25, %26 : vector<1x8x128xf32>
    %c0_11 = arith.constant 0 : index
    %c0_12 = arith.constant 0 : index
    %c0_13 = arith.constant 0 : index
    %28 = vector.load %arg4[%c0_11, %c0_12, %c0_13] : memref<1x8x128xf32, #tpu.memory_space<vmem>>, vector<1x8x128xf32>
    tpu.vector_store %arg4[%c0_11, %c0_12, %c0_13], %27 {strides = array<i32>} : memref<1x8x128xf32, #tpu.memory_space<vmem>>, vector<1x8x128xf32>,
    return
  }
  func.func @transform_0(%arg0: i32, %arg1: i32) -> (i32, i32) {
    %c1_i32 = arith.constant 1 : i32
    %0 = arith.muli %arg0, %c1_i32 : i32
    %1 = arith.addi %0, %arg1 : i32
    %c0_i32 = arith.constant 0 : i32
    %c0_i32_0 = arith.constant 0 : i32
    return %1, %c0_i32 : i32, i32
  }
  func.func @transform_1(%arg0: i32, %arg1: i32) -> (i32, i32) {
    %c1_i32 = arith.constant 1 : i32
    %0 = arith.muli %arg0, %c1_i32 : i32
    %1 = arith.addi %0, %arg1 : i32
    %c0_i32 = arith.constant 0 : i32
    %c0_i32_0 = arith.constant 0 : i32
    return %1, %c0_i32 : i32, i32
  }
  func.func @transform_2(%arg0: i32, %arg1: i32) -> (i32, i32, i32) {
    %c0_i32 = arith.constant 0 : i32
    %c0_i32_0 = arith.constant 0 : i32
    %c0_i32_1 = arith.constant 0 : i32
    return %arg0, %c0_i32, %c0_i32_0 : i32, i32, i32
  }
}

</mosaic_0001>

<bundles_post_ra>
// kernel: tpu_custom_call.1
= control target key start
LH: loop header
LB: loop body
LE: loop exit
PB: predicated region body
PF: predicated region fallthrough
CT: control target
= control target key end

     0   :  { %vm53_vm0 = vcmask 80896   ;;  %s184_s0 = inlined_call_operand.vmem [shape: f32[8,10], index: 0, kind: input, shape index: {}]   ;;  %s185_s1 = inlined_call_operand.vmem [shape: s32[8,1], index: 1, kind: input, shape index: {}]   ;;  %s186_s2 = inlined_call_operand.hbm [shape: f32[1,8,128], index: 2, kind: output, shape index: {}]  }
   0x1   :  { %v51_v0 = vld [vmem:[%s184_s0] sm:$0xff] }
   0x2   :  { %7 = vsyncpa [#allocation3], 0  ;;  %v54_v1 = vsel %vm53_vm0, %v51_v0, -inf  ;;  %v155_v2 = vmov 0   ;;  %v52_v3 = vld [vmem:[%s185_s1] sm:$0xff]  ;;  %v65_v9 = vlaneseq  ;;  %vm76_vm2 = vcmask 7168  }
   0x3   :  { %124 = vset.pattern.permute.xlu0 %v155_v2  ;;  %s156_s0 = smov [#allocation2]   ;;  %s98_s15 = sshll.u32 %s186_s2, 4  ;;  %s99_s15 = int_to_ptr.hbm [resolvable:$true] %s98_s15 }
   0x4   :  { %55 = vmax.xlane.f32.xlu0 %v54_v1  ;;  %v66_v10 = vand.u32 127, %v65_v9  ;;  %s96_s1 = sshll.u32 %s156_s0, 4  ;;  %s97_s1 = int_to_ptr.vmem [resolvable:$true] %s96_s1 }
  0x18   :  { %68 = vperm.xlu0 %124, %v52_v3  }
  0x77   :  { %v56_v4 = vpop.xlane.xlu0 %55 }
  0x78   :  { %v57_v5 = vsub.f32 %v51_v0, %v56_v4 }
  0x7a   :  { %v58_v6 = vmul.f32 1.442695, %v57_v5 }
  0x7c   :  { %125 = vpow2.f32 %v58_v6 }
  0x82   :  { %v126_v7 = vpop.eup %125 }
  0x83   :  { %v60_v8 = vsel %vm53_vm0, %v126_v7, 0.0 }
  0x84   :  { %61 = vadd.xlane.f32.xlu1 %v60_v8 }
  0x8a   :  { %v69_v11 = vpop.permute.xlu0 %68 }
  0x8b   :  { %vm70_vm1 = vcmp.eq.s32.totalorder %v66_v10, %v69_v11 }
  0x8c   :  { %v71_v12 = vsel %vm70_vm1, %v57_v5, 0.0 }
  0x8d   :  { %v72_v13 = vsel %vm53_vm0, %v71_v12, 0.0 }
  0x8e   :  { %73 = vadd.xlane.f32.xlu1 %v72_v13 }
  0xf7   :  { %v62_v14 = vpop.xlane.xlu1 %61 }
  0xf8   :  { %127 = vlog2.f32 %v62_v14 }
  0xfe   :  { %v128_v15 = vpop.eup %127 }
  0xff   :  { %v64_v16 = vmul.f32 0.6931472, %v128_v15 }
 0x101   :  { %v74_v17 = vpop.xlane.xlu1 %73 }
 0x102   :  { %v75_v18 = vsub.f32 %v64_v16, %v74_v17 }
 0x104   :  { %v77_v19 = vsel %vm76_vm2, %v75_v18, 0.0 }
 0x105   :  { %78 = vadd.xlane.f32.xlu2 %v77_v19 }
 0x178   :  { %v79_v20 = vpop.xlane.xlu2 %78 }
 0x179   :  { %v80_v21 = vrot.slane %v79_v20, 4 }
 0x17b   :  { %v81_v22 = vadd.f32 %v80_v21, %v79_v20 }
 0x17d   :  { %v82_v23 = vrot.slane %v81_v22, 2 }
 0x17f   :  { %v83_v24 = vadd.f32 %v82_v23, %v81_v22 }
 0x181   :  { %v84_v25 = vrot.slane %v83_v24, 1 }
 0x183   :  { %v85_v26 = vadd.f32 %v84_v25, %v83_v24 }
 0x185   :  { %119 = vpush %v85_v26 }
 0x1b6   :  { %s120_s16 = spop %119 }
 0x1b7   :  { %v88_v27 = vstv %s120_s16 }
 0x1b8   :  { %90 = vst [vmem:[#allocation2] sm:$0xff] %v88_v27 }
 0x1b9   :  { %101 = dma.vmem_to_hbm [thread:$0]  %s97_s1, 128, %s99_s15, [#allocation3]  }
 0x1ba   :  { %153 = dma.done.wait [#allocation3], 128  }
 0x1bb   :  { %154 = vsyncadd [#allocation3], 4294967168 }
 0x1bc   :  { %106 = vsyncpa [#allocation3], 1 }

</bundles_post_ra>
